<compile_context>
chip_gen: v5e
topology: v5e:2x2
jax: 0.10.0
libtpu: 0.0.40
codegen_flags: <defaults>
</compile_context>

<pallas_src>
import functools

import jax
import jax.numpy as jnp
from jax.experimental import pallas as pl
from jax.experimental.pallas import tpu as pltpu


def _vmem_capacity_bytes() -> int:
    """Per-chip VMEM capacity; conservative (v7x) fallback if unavailable."""
    try:
        info = pltpu.get_tpu_info()
        cap = getattr(info, "vmem_capacity_bytes", None)
        if cap:
            return int(cap)
    except Exception:
        pass
    return 64 * 1024 * 1024


def _select_tiles(B, S, H, itemsize, budget):
    """Pick (block_b, block_s).

    The encoder tile is (block_b, block_s, H) and Pallas double-buffers it, so
    2 * block_b * block_s * H * itemsize must stay within the budget (plus a
    reserve for the weights, dec/out blocks and the f32 scratch accumulators).
    """
    reserve = 2 * (2 * H * H + H) * 4 + 6 * min(B, 512) * H * 4
    enc_budget = max(budget - reserve, 1 << 20)

    rows_full_s = enc_budget // max(2 * S * H * itemsize, 1)

    if B <= 8:
        block_b = B
    elif rows_full_s >= 16:
        # Whole sequence fits per step: tile the batch only.  Keep >= 2 grid
        # steps so the next tile's HBM DMA hides under compute and the
        # "parallel" axis can shard across both v7x TensorCores.
        block_b = int(min(rows_full_s, 512, -(-B // 2)))
        block_b = max(8, (block_b // 8) * 8)
        block_b = min(block_b, B)
    else:
        # Sequence must be streamed anyway; keep a small batch tile.
        block_b = 8

    # Sequence tile: as large as the remaining budget allows.
    max_s = enc_budget // max(2 * block_b * H * itemsize, 1)
    if max_s >= S:
        block_s = S
    else:
        block_s = min(S, max(8, int((max_s // 8) * 8)))
    return block_b, block_s


def _attention_kernel(enc_ref, dec_ref, w1t_ref, w2t_ref, b_ref, out_ref,
                      m_sc, l_sc, ctx_sc, *, seq_len, tile_s, mask_seq):
    # enc_ref: (TB, ts, H)   dec_ref: (TB, H)
    # w1t_ref / w2t_ref: (H, H)   b_ref: (1, H)   out_ref: (TB, H)
    # scratch: m_sc (TB,1) f32, l_sc (TB,1) f32, ctx_sc (TB,H) f32
    s_idx = pl.program_id(1)

    @pl.when(s_idx == 0)
    def _init():
        m_sc[...] = jnp.full_like(m_sc, -jnp.inf)
        l_sc[...] = jnp.zeros_like(l_sc)
        ctx_sc[...] = jnp.zeros_like(ctx_sc)

    enc = enc_ref[...]                                   # (TB, ts, H)
    dec = dec_ref[...].astype(jnp.float32)               # (TB, H), small

    # scores[b, s] = sum_h enc[b, s, h] * dec[b, h]
    # VPU elementwise mul + lane reduce (avoids TB degenerate N=1 matmuls).
    scores = jnp.sum(enc * dec[:, None, :], axis=-1)     # (TB, ts), f32

    if mask_seq:
        pos = s_idx * tile_s + jax.lax.broadcasted_iota(jnp.int32, scores.shape, 1)
        valid = pos < seq_len
        scores = jnp.where(valid, scores, -jnp.inf)

    # Online (flash-style) softmax across sequence tiles.
    m_prev = m_sc[...]                                    # (TB, 1)
    m_new = jnp.maximum(m_prev, jnp.max(scores, axis=-1, keepdims=True))
    alpha = jnp.exp(m_prev - m_new)                       # (TB, 1)
    p = jnp.exp(scores - m_new)                           # (TB, ts), f32

    if mask_seq:
        # Zero out padded positions and any OOB-read garbage so it cannot
        # poison the context accumulation (0 * NaN == NaN otherwise).
        p = jnp.where(valid, p, 0.0)
        enc_c = jnp.where(valid[:, :, None], enc, jnp.zeros_like(enc))
    else:
        enc_c = enc

    l_sc[...] = alpha * l_sc[...] + jnp.sum(p, axis=-1, keepdims=True)
    # context contribution: sum_s p[b,s] * enc[b,s,:]  (sublane reduce, f32 acc)
    ctx_sc[...] = alpha * ctx_sc[...] + jnp.sum(p[:, :, None] * enc_c, axis=1)
    m_sc[...] = m_new

    @pl.when(s_idx == pl.num_programs(1) - 1)
    def _finalize():
        context = ctx_sc[...] * pl.reciprocal(l_sc[...], approx=False)  # (TB, H)
        h = (jnp.dot(dec, w1t_ref[...], preferred_element_type=jnp.float32)
             + jnp.dot(context, w2t_ref[...], preferred_element_type=jnp.float32)
             + b_ref[...])
        out_ref[...] = jnp.tanh(h).astype(out_ref.dtype)


def attention_layer(encoder_states, decoder_state, w1, b1, w2, b2,
                    *, block_b=None, block_s=None):
    """encoder_states: (B, S, H); decoder_state: (B, H, 1) -> (B, H)."""
    B, S, H = encoder_states.shape
    itemsize = jnp.dtype(encoder_states.dtype).itemsize

    vmem_cap = _vmem_capacity_bytes()
    auto_b, auto_s = _select_tiles(B, S, H, itemsize, vmem_cap // 2)
    block_b = auto_b if block_b is None else block_b
    block_s = auto_s if block_s is None else block_s

    nb = pl.cdiv(B, block_b)
    ns = pl.cdiv(S, block_s)
    mask_seq = (S % block_s) != 0

    dec2d = decoder_state[:, :, 0]                        # (B, H)
    w1t = w1.T                                            # (H, H)
    w2t = w2.T                                            # (H, H)
    bias = (b1 + b2).reshape(1, H).astype(jnp.float32)    # (1, H)

    # Rough VMEM need (enc double-buffered + small buffers + weights + scratch),
    # with headroom; capped below physical capacity.
    need = (2 * block_b * block_s * H * itemsize
            + 4 * block_b * H * itemsize
            + 2 * (2 * H * H + H) * 4
            + block_b * (H + 2) * 4)
    vmem_limit = int(min(max(need + (8 << 20), 32 << 20), int(vmem_cap * 0.9)))

    kernel = functools.partial(
        _attention_kernel, seq_len=S, tile_s=block_s, mask_seq=mask_seq)

    return pl.pallas_call(
        kernel,
        out_shape=jax.ShapeDtypeStruct((B, H), encoder_states.dtype),
        grid_spec=pltpu.PrefetchScalarGridSpec(
            num_scalar_prefetch=0,
            grid=(nb, ns),
            in_specs=[
                pl.BlockSpec((block_b, block_s, H), lambda i, s: (i, s, 0)),  # enc
                pl.BlockSpec((block_b, H), lambda i, s: (i, 0)),              # dec
                pl.BlockSpec((H, H), lambda i, s: (0, 0)),                    # w1.T
                pl.BlockSpec((H, H), lambda i, s: (0, 0)),                    # w2.T
                pl.BlockSpec((1, H), lambda i, s: (0, 0)),                    # b1+b2
            ],
            out_specs=pl.BlockSpec((block_b, H), lambda i, s: (i, 0)),
            scratch_shapes=[
                pltpu.VMEM((block_b, 1), jnp.float32),   # m (running max)
                pltpu.VMEM((block_b, 1), jnp.float32),   # l (running denom)
                pltpu.VMEM((block_b, H), jnp.float32),   # context accumulator
            ],
        ),
        compiler_params=pltpu.CompilerParams(
            dimension_semantics=("parallel", "arbitrary"),
            vmem_limit_bytes=vmem_limit,
        ),
    )(encoder_states, dec2d, w1t, w2t, bias)


def reference(encoder_states, decoder_state, w1, b1, w2, b2):
    """Pure-JAX reference mirroring the PyTorch forward pass."""
    alignment = jnp.matmul(encoder_states, decoder_state)              # (B, S, 1)
    weights = jax.nn.softmax(alignment, axis=1)                        # (B, S, 1)
    context = jnp.matmul(jnp.swapaxes(encoder_states, 1, 2), weights)  # (B, H, 1)
    dec = decoder_state[:, :, 0]
    ctx = context[:, :, 0]
    return jnp.tanh(dec @ w1.T + b1 + ctx @ w2.T + b2)                 # (B, H)


if __name__ == "__main__":
    B, S, H = 2, 8, 32
    key = jax.random.PRNGKey(0)
    k_enc, k_dec, k_w1, k_b1, k_w2, k_b2 = jax.random.split(key, 6)

    encoder_states = jax.random.normal(k_enc, (B, S, H), dtype=jnp.float32)
    decoder_state = jax.random.normal(k_dec, (B, H, 1), dtype=jnp.float32)

    # Deterministic parameter init (PyTorch Linear shapes: W (H,H), b (H,))
    bound = 1.0 / (H ** 0.5)
    w1 = jax.random.uniform(k_w1, (H, H), minval=-bound, maxval=bound, dtype=jnp.float32)
    b1 = jax.random.uniform(k_b1, (H,), minval=-bound, maxval=bound, dtype=jnp.float32)
    w2 = jax.random.uniform(k_w2, (H, H), minval=-bound, maxval=bound, dtype=jnp.float32)
    b2 = jax.random.uniform(k_b2, (H,), minval=-bound, maxval=bound, dtype=jnp.float32)

    out = attention_layer(encoder_states, decoder_state, w1, b1, w2, b2)
    out = jax.block_until_ready(out)

    ref = reference(encoder_states, decoder_state, w1, b1, w2, b2)
    assert out.shape == (B, H)
    assert jnp.allclose(out, ref, atol=1e-5, rtol=1e-5), "mismatch vs reference"

    print("KERNEL_OK")
</pallas_src>

<mosaic_0001>
module attributes {stable_mosaic.version = 11 : i64} {
  func.func @_attention_kernel(%arg0: i32, %arg1: i32, %arg2: memref<2x8x32xf32, #tpu.memory_space<vmem>>, %arg3: memref<2x32xf32, #tpu.memory_space<vmem>>, %arg4: memref<32x32xf32, #tpu.memory_space<vmem>>, %arg5: memref<32x32xf32, #tpu.memory_space<vmem>>, %arg6: memref<1x32xf32, #tpu.memory_space<vmem>>, %arg7: memref<2x32xf32, #tpu.memory_space<vmem>>, %arg8: memref<2x1xf32, #tpu.memory_space<vmem>>, %arg9: memref<2x1xf32, #tpu.memory_space<vmem>>, %arg10: memref<2x32xf32, #tpu.memory_space<vmem>>) attributes {dimension_semantics = [#tpu.dimension_semantics<parallel>, #tpu.dimension_semantics<arbitrary>], iteration_bounds = array<i64: 1, 1>, scalar_prefetch = 0 : i64, scratch_operands = 3 : i64, tpu.core_type = #tpu.core_type<tc>, window_params = [{transform_indices = @transform_0, window_bounds = array<i64: 2, 8, 32>}, {transform_indices = @transform_1, window_bounds = array<i64: 2, 32>}, {pipeline_mode = #tpu.pipeline_mode<synchronous>, transform_indices = @transform_2, window_bounds = array<i64: 32, 32>}, {pipeline_mode = #tpu.pipeline_mode<synchronous>, transform_indices = @transform_3, window_bounds = array<i64: 32, 32>}, {pipeline_mode = #tpu.pipeline_mode<synchronous>, transform_indices = @transform_4, window_bounds = array<i64: 1, 32>}, {transform_indices = @transform_5, window_bounds = array<i64: 2, 32>}]} {
    %c0_i32 = arith.constant 0 : i32
    %0 = arith.cmpi eq, %arg1, %c0_i32 : i32
    %1 = arith.extui %0 : i1 to i32
    %c0_i32_0 = arith.constant 0 : i32
    %2 = arith.cmpi ne, %1, %c0_i32_0 : i32
    scf.if %2 {
      %cst_22 = arith.constant 0xFF800000 : f32
      %37 = vector.broadcast %cst_22 : f32 to vector<2x1xf32>
      %c0_23 = arith.constant 0 : index
      %c0_24 = arith.constant 0 : index
      %38 = vector.load %arg8[%c0_23, %c0_24] : memref<2x1xf32, #tpu.memory_space<vmem>>, vector<2x1xf32>
      tpu.vector_store %arg8[%c0_23, %c0_24], %37 {strides = array<i32>} : memref<2x1xf32, #tpu.memory_space<vmem>>, vector<2x1xf32>,
      %cst_25 = arith.constant 0.000000e+00 : f32
      %39 = vector.broadcast %cst_25 : f32 to vector<2x1xf32>
      %c0_26 = arith.constant 0 : index
      %c0_27 = arith.constant 0 : index
      %40 = vector.load %arg9[%c0_26, %c0_27] : memref<2x1xf32, #tpu.memory_space<vmem>>, vector<2x1xf32>
      tpu.vector_store %arg9[%c0_26, %c0_27], %39 {strides = array<i32>} : memref<2x1xf32, #tpu.memory_space<vmem>>, vector<2x1xf32>,
      %cst_28 = arith.constant 0.000000e+00 : f32
      %41 = vector.broadcast %cst_28 : f32 to vector<2x32xf32>
      %c0_29 = arith.constant 0 : index
      %c0_30 = arith.constant 0 : index
      %42 = vector.load %arg10[%c0_29, %c0_30] : memref<2x32xf32, #tpu.memory_space<vmem>>, vector<2x32xf32>
      tpu.vector_store %arg10[%c0_29, %c0_30], %41 {strides = array<i32>} : memref<2x32xf32, #tpu.memory_space<vmem>>, vector<2x32xf32>,
    } else {
    }
    %c0 = arith.constant 0 : index
    %c0_1 = arith.constant 0 : index
    %c0_2 = arith.constant 0 : index
    %3 = vector.load %arg2[%c0, %c0_1, %c0_2] : memref<2x8x32xf32, #tpu.memory_space<vmem>>, vector<2x8x32xf32>
    %c0_3 = arith.constant 0 : index
    %c0_4 = arith.constant 0 : index
    %4 = vector.load %arg3[%c0_3, %c0_4] : memref<2x32xf32, #tpu.memory_space<vmem>>, vector<2x32xf32>
    %5 = vector.shape_cast %4 : vector<2x32xf32> to vector<2x1x32xf32>
    %6 = vector.broadcast %5 : vector<2x1x32xf32> to vector<2x8x32xf32>
    %7 = arith.mulf %3, %6 : vector<2x8x32xf32>
    %cst = arith.constant dense<0.000000e+00> : vector<2x8xf32>
    %8 = vector.multi_reduction <add>, %7, %cst [2] : vector<2x8x32xf32> to vector<2x8xf32>
    %c0_5 = arith.constant 0 : index
    %c0_6 = arith.constant 0 : index
    %9 = vector.load %arg8[%c0_5, %c0_6] : memref<2x1xf32, #tpu.memory_space<vmem>>, vector<2x1xf32>
    %cst_7 = arith.constant dense<0xFF800000> : vector<2xf32>
    %10 = vector.multi_reduction <maximumf>, %8, %cst_7 [1] : vector<2x8xf32> to vector<2xf32>
    %11 = vector.shape_cast %10 : vector<2xf32> to vector<2x1xf32>
    %12 = arith.maximumf %9, %11 : vector<2x1xf32>
    %13 = arith.subf %9, %12 : vector<2x1xf32>
    %14 = math.exp %13 : vector<2x1xf32>
    %15 = vector.broadcast %12 : vector<2x1xf32> to vector<2x8xf32>
    %16 = arith.subf %8, %15 : vector<2x8xf32>
    %17 = math.exp %16 : vector<2x8xf32>
    %c0_8 = arith.constant 0 : index
    %c0_9 = arith.constant 0 : index
    %18 = vector.load %arg9[%c0_8, %c0_9] : memref<2x1xf32, #tpu.memory_space<vmem>>, vector<2x1xf32>
    %19 = arith.mulf %14, %18 : vector<2x1xf32>
    %cst_10 = arith.constant dense<0.000000e+00> : vector<2xf32>
    %20 = vector.multi_reduction <add>, %17, %cst_10 [1] : vector<2x8xf32> to vector<2xf32>
    %21 = vector.shape_cast %20 : vector<2xf32> to vector<2x1xf32>
    %22 = arith.addf %19, %21 : vector<2x1xf32>
    %c0_11 = arith.constant 0 : index
    %c0_12 = arith.constant 0 : index
    %23 = vector.load %arg9[%c0_11, %c0_12] : memref<2x1xf32, #tpu.memory_space<vmem>>, vector<2x1xf32>
    tpu.vector_store %arg9[%c0_11, %c0_12], %22 {strides = array<i32>} : memref<2x1xf32, #tpu.memory_space<vmem>>, vector<2x1xf32>,
    %c0_13 = arith.constant 0 : index
    %c0_14 = arith.constant 0 : index
    %24 = vector.load %arg10[%c0_13, %c0_14] : memref<2x32xf32, #tpu.memory_space<vmem>>, vector<2x32xf32>
    %25 = vector.broadcast %14 : vector<2x1xf32> to vector<2x32xf32>
    %26 = arith.mulf %25, %24 : vector<2x32xf32>
    %27 = vector.shape_cast %17 : vector<2x8xf32> to vector<2x8x1xf32>
    %28 = vector.broadcast %27 : vector<2x8x1xf32> to vector<2x8x32xf32>
    %29 = arith.mulf %28, %3 : vector<2x8x32xf32>
    %cst_15 = arith.constant dense<0.000000e+00> : vector<2x32xf32>
    %30 = vector.multi_reduction <add>, %29, %cst_15 [1] : vector<2x8x32xf32> to vector<2x32xf32>
    %31 = arith.addf %26, %30 : vector<2x32xf32>
    %c0_16 = arith.constant 0 : index
    %c0_17 = arith.constant 0 : index
    %32 = vector.load %arg10[%c0_16, %c0_17] : memref<2x32xf32, #tpu.memory_space<vmem>>, vector<2x32xf32>
    tpu.vector_store %arg10[%c0_16, %c0_17], %31 {strides = array<i32>} : memref<2x32xf32, #tpu.memory_space<vmem>>, vector<2x32xf32>,
    %c0_18 = arith.constant 0 : index
    %c0_19 = arith.constant 0 : index
    %33 = vector.load %arg8[%c0_18, %c0_19] : memref<2x1xf32, #tpu.memory_space<vmem>>, vector<2x1xf32>
    tpu.vector_store %arg8[%c0_18, %c0_19], %12 {strides = array<i32>} : memref<2x1xf32, #tpu.memory_space<vmem>>, vector<2x1xf32>,
    %c0_i32_20 = arith.constant 0 : i32
    %34 = arith.cmpi eq, %arg1, %c0_i32_20 : i32
    %35 = arith.extui %34 : i1 to i32
    %c0_i32_21 = arith.constant 0 : i32
    %36 = arith.cmpi ne, %35, %c0_i32_21 : i32
    scf.if %36 {
      %c0_22 = arith.constant 0 : index
      %c0_23 = arith.constant 0 : index
      %37 = vector.load %arg10[%c0_22, %c0_23] : memref<2x32xf32, #tpu.memory_space<vmem>>, vector<2x32xf32>
      %c0_24 = arith.constant 0 : index
      %c0_25 = arith.constant 0 : index
      %38 = vector.load %arg9[%c0_24, %c0_25] : memref<2x1xf32, #tpu.memory_space<vmem>>, vector<2x1xf32>
      %39 = tpu.reciprocal %38 : vector<2x1xf32> -> vector<2x1xf32>
      %40 = vector.broadcast %39 : vector<2x1xf32> to vector<2x32xf32>
      %41 = arith.mulf %37, %40 : vector<2x32xf32>
      %c0_26 = arith.constant 0 : index
      %c0_27 = arith.constant 0 : index
      %42 = vector.load %arg4[%c0_26, %c0_27] : memref<32x32xf32, #tpu.memory_space<vmem>>, vector<32x32xf32>
      %cst_28 = arith.constant dense<0.000000e+00> : vector<2x32xf32>
      %43 = tpu.matmul %4, %42, %cst_28 {dimension_numbers = #tpu.dot_dimension_numbers<[1], [0], [0], [1], [0, 0, 1, 1], [], []>} : vector<2x32xf32>, vector<32x32xf32>, vector<2x32xf32> -> vector<2x32xf32>
      %c0_29 = arith.constant 0 : index
      %c0_30 = arith.constant 0 : index
      %44 = vector.load %arg5[%c0_29, %c0_30] : memref<32x32xf32, #tpu.memory_space<vmem>>, vector<32x32xf32>
      %cst_31 = arith.constant dense<0.000000e+00> : vector<2x32xf32>
      %45 = tpu.matmul %41, %44, %cst_31 {dimension_numbers = #tpu.dot_dimension_numbers<[1], [0], [0], [1], [0, 0, 1, 1], [], []>} : vector<2x32xf32>, vector<32x32xf32>, vector<2x32xf32> -> vector<2x32xf32>
      %46 = arith.addf %43, %45 : vector<2x32xf32>
      %c0_32 = arith.constant 0 : index
      %c0_33 = arith.constant 0 : index
      %47 = vector.load %arg6[%c0_32, %c0_33] : memref<1x32xf32, #tpu.memory_space<vmem>>, vector<1x32xf32>
      %48 = vector.broadcast %47 : vector<1x32xf32> to vector<2x32xf32>
      %49 = arith.addf %46, %48 : vector<2x32xf32>
      %50 = math.tanh %49 : vector<2x32xf32>
      %c0_34 = arith.constant 0 : index
      %c0_35 = arith.constant 0 : index
      %51 = vector.load %arg7[%c0_34, %c0_35] : memref<2x32xf32, #tpu.memory_space<vmem>>, vector<2x32xf32>
      tpu.vector_store %arg7[%c0_34, %c0_35], %50 {strides = array<i32>} : memref<2x32xf32, #tpu.memory_space<vmem>>, vector<2x32xf32>,
    } else {
    }
    return
  }
  func.func @transform_0(%arg0: i32, %arg1: i32) -> (i32, i32, i32) {
    %c0_i32 = arith.constant 0 : i32
    %c0_i32_0 = arith.constant 0 : i32
    return %arg0, %arg1, %c0_i32 : i32, i32, i32
  }
  func.func @transform_1(%arg0: i32, %arg1: i32) -> (i32, i32) {
    %c0_i32 = arith.constant 0 : i32
    %c0_i32_0 = arith.constant 0 : i32
    return %arg0, %c0_i32 : i32, i32
  }
  func.func @transform_2(%arg0: i32, %arg1: i32) -> (i32, i32) {
    %c0_i32 = arith.constant 0 : i32
    %c0_i32_0 = arith.constant 0 : i32
    %c0_i32_1 = arith.constant 0 : i32
    return %c0_i32, %c0_i32_0 : i32, i32
  }
  func.func @transform_3(%arg0: i32, %arg1: i32) -> (i32, i32) {
    %c0_i32 = arith.constant 0 : i32
    %c0_i32_0 = arith.constant 0 : i32
    %c0_i32_1 = arith.constant 0 : i32
    return %c0_i32, %c0_i32_0 : i32, i32
  }
  func.func @transform_4(%arg0: i32, %arg1: i32) -> (i32, i32) {
    %c0_i32 = arith.constant 0 : i32
    %c0_i32_0 = arith.constant 0 : i32
    %c0_i32_1 = arith.constant 0 : i32
    return %c0_i32, %c0_i32_0 : i32, i32
  }
  func.func @transform_5(%arg0: i32, %arg1: i32) -> (i32, i32) {
    %c0_i32 = arith.constant 0 : i32
    %c0_i32_0 = arith.constant 0 : i32
    return %arg0, %c0_i32 : i32, i32
  }
}

</mosaic_0001>

<bundles_post_ra>
// kernel: tpu_custom_call.1
= control target key start
LH: loop header
LB: loop body
LE: loop exit
PB: predicated region body
PF: predicated region fallthrough
CT: control target
= control target key end

     0   :  { %10 = vsyncpa [#allocation6], 0  ;;  %s533_s0 = inlined_call_operand.hbm [shape: f32[2,8,32], index: 0, kind: input, shape index: {}]   ;;  %s534_s1 = inlined_call_operand.hbm [shape: f32[2,32], index: 1, kind: input, shape index: {}]   ;;  %s535_s2 = inlined_call_operand.hbm [shape: f32[32,32], index: 2, kind: input, shape index: {}]   ;;  %s536_s3 = inlined_call_operand.hbm [shape: f32[32,32], index: 3, kind: input, shape index: {}]   ;;  %s537_s4 = inlined_call_operand.vmem [shape: f32[1,32], index: 4, kind: input, shape index: {}]   ;;  %s538_s5 = inlined_call_operand.hbm [shape: f32[2,32], index: 5, kind: output, shape index: {}]  }
   0x1   :  { %11 = vsyncpa [#allocation9], 0 }
   0x2   :  { %12 = vsyncpa [#allocation12], 0  ;;  %s32_s20 = sshll.u32 %s534_s1, 4  ;;  %s33_s20 = int_to_ptr.hbm [resolvable:$true] %s32_s20 }
   0x3   :  { %13 = vsyncpa [#allocation7], 0  ;;  %s452_s21 = smov [#allocation8]   ;;  %s18_s25 = sshll.u32 %s533_s0, 4  ;;  %s19_s25 = int_to_ptr.hbm [resolvable:$true] %s18_s25 }
   0x4   :  { %s34_s22 = sshll.u32 %s452_s21, 4  ;;  %s453_s26 = smov [#allocation5]   ;;  %s35_s22 = int_to_ptr.vmem [resolvable:$true] %s34_s22 }
   0x5   :  { %37 = dma.hbm_to_vmem [thread:$0]  %s33_s20, 32, %s35_s22, [#allocation9]  }
   0x6   :  { %s20_s27 = sshll.u32 %s453_s26, 4  ;;  %s454_s28 = smov 128   ;;  %s21_s27 = int_to_ptr.vmem [resolvable:$true] %s20_s27 }
   0x7   :  { %s455_s29 = smov 8   ;;  %s42_s1 = sshll.u32 %s535_s2, 4  ;;  %s43_s1 = int_to_ptr.hbm [resolvable:$true] %s42_s1 }
   0x8   :  { %26 = dma.hbm_to_vmem [thread:$0]  %s19_s25, 256, %s21_s27, [#allocation6], %s454_s28, %s454_s28, %s455_s29  }
   0x9   :  { %s456_s7 = smov [#allocation10]   ;;  %s55_s0 = sshll.u32 %s536_s3, 4  ;;  %s56_s0 = int_to_ptr.hbm [resolvable:$true] %s55_s0 }
   0xa   :  { %s44_s8 = sshll.u32 %s456_s7, 4  ;;  %s457_s11 = smov [#allocation11]   ;;  %s45_s8 = int_to_ptr.vmem [resolvable:$true] %s44_s8 }
   0xb   :  { %50 = dma.hbm_to_vmem [thread:$0]  %s43_s1, 512, %s45_s8, [#allocation9], %s454_s28, %s454_s28, %s455_s29  }
   0xc   :  { %s57_s12 = sshll.u32 %s457_s11, 4  ;;  %s58_s12 = int_to_ptr.vmem [resolvable:$true] %s57_s12 }
   0xd   :  { %63 = dma.hbm_to_vmem [thread:$0]  %s56_s0, 512, %s58_s12, [#allocation12], %s454_s28, %s454_s28, %s455_s29  }
   0xe   :  { %444 = dma.done.wait [#allocation6], 256  }
   0xf   :  { %445 = vsyncadd [#allocation6], 4294967040 }
  0x10   :  { %446 = dma.done.wait [#allocation9], 544  }
  0x11   :  { %447 = vsyncadd [#allocation9], 4294966752 }
  0x12   :  { %448 = dma.done.wait [#allocation12], 512  }
  0x13   :  { %449 = vsyncadd [#allocation12], 4294966784  ;;  %v91_v0 = vld [vmem:[#allocation5] sm:$0xff]  ;;  %v504_v1 = vld [vmem:[#allocation8] sm:$0x3]  ;;  %vm102_vm0 = vcmask 261120   ;;  %v112_v12 = vlaneseq }
  0x14   :  { %v96_v2 = vperm.slane %v504_v1, 0  ;;  %v95_v3 = vrot.slane %v504_v1, 1  ;;  %v92_v6 = vld [vmem:[#allocation5 + $0x8] sm:$0xff]  ;;  %vm86_vm1 = vcmask 1024   ;;  %v458_v10 = vmov -inf   ;;  %s461_s13 = smov [#allocation13]  }
  0x15   :  { %87 = vst.msk [vmem:[#allocation2] sm:$0x3] %vm86_vm1, %v458_v10  ;;  %v113_v13 = vand.u32 127, %v112_v12  ;;  %vm116_vm2 = vcmask 1041409   ;;  %vm119_vm3 = vcmask 58368   ;;  %v459_v19 = vmov 0  }
  0x16   :  { %v100_v4 = vmul.f32 %v96_v2, %v91_v0  ;;  %v97_v5 = vperm.slane %v95_v3, 0  ;;  %310 = vset.pattern.permute.xlu1 %v459_v19  ;;  %311 = vset.pattern.permute.xlu2 %v459_v19  ;;  %v460_v20 = vmov 0.0   ;;  %vm89_vm4 = vcmask 254976   ;;  %v222_v2 = vld [vmem:[#allocation10 + $0x18] sm:$0xff]  ;;  %v225_v3 = vld [vmem:[#allocation11 + $0x10] sm:$0xff]  ;;  %s284_s14 = sshll.u32 %s461_s13, 4  ;;  %s285_s14 = int_to_ptr.vmem [resolvable:$true] %s284_s14 }
  0x17   :  { %312 = vset.pattern.permute.xlu0 %v459_v19  ;;  %88 = vst.msk [vmem:[#allocation3] sm:$0x3] %vm86_vm1, %v460_v20  ;;  %264 = vmatpush.msra.mxu1 %v222_v2  ;;  %s286_s17 = sshll.u32 %s538_s5, 4  ;;  %s287_s17 = int_to_ptr.hbm [resolvable:$true] %s286_s17 }
  0x18   :  { %v103_v7 = vsel %vm102_vm0, %v100_v4, 0.0  ;;  %v101_v8 = vmul.f32 %v97_v5, %v92_v6  ;;  %90 = vst.msk [vmem:[#allocation4] sm:$0x3] %vm89_vm4, %v460_v20  ;;  %v221_v4 = vld [vmem:[#allocation10 + $0x10] sm:$0xff]  ;;  %v224_v5 = vld [vmem:[#allocation11 + $0x8] sm:$0xff] }
  0x19   :  { %104 = vadd.xlane.f32.xlu0 %v103_v7  ;;  %265 = vmatpush.msra.mxu1 %v221_v4 }
  0x1a   :  { %v106_v9 = vsel %vm102_vm0, %v101_v8, 0.0 }
  0x1c   :  { %v109_v21 = vld [vmem:[#allocation2] sm:$0x3] }
  0x1e   :  { %v141_v63 = vld [vmem:[#allocation3] sm:$0x3] }
  0x1f   :  { %v161_v56 = vld [vmem:[#allocation4] sm:$0x3] }
  0x21   :  { %107 = vadd.xlane.f32.xlu0 %v106_v9 }
  0x8c   :  { %v105_v11 = vpop.xlane.xlu0 %104 }
  0x8d   :  { %v114_v15 = vperm.slane %v105_v11, %v113_v13 }
  0x94   :  { %v108_v14 = vpop.xlane.xlu0 %107 }
  0x95   :  { %v115_v16 = vperm.slane %v108_v14, %v113_v13 }
  0x97   :  { %v117_v17 = vsel %vm116_vm2, %v115_v16, %v114_v15 }
  0x98   :  { %v120_v18 = vsel %vm119_vm3, %v117_v17, -inf }
  0x99   :  { %121 = vmax.xlane.f32.xlu1 %v120_v18 }
 0x10c   :  { %v122_v22 = vpop.xlane.xlu1 %121 }
 0x10d   :  { %v123_v23 = vmax.f32 %v109_v21, %v122_v22  ;;  %v219_v22 = vld [vmem:[#allocation10] sm:$0xff] }
 0x10f   :  { %v124_v24 = vsub.f32 %v109_v21, %v123_v23  ;;  %193 = vst.msk [vmem:[#allocation2] sm:$0x3] %vm86_vm1, %v123_v23  ;;  %129 = vperm.xlu1 %310, %v123_v23   ;;  %v223_v21 = vld [vmem:[#allocation11] sm:$0xff] }
 0x111   :  { %v125_v33 = vmul.f32 1.442695, %v124_v24 }
 0x181   :  { %v130_v25 = vpop.permute.xlu1 %129 }
 0x182   :  { %v131_v26 = vperm.slane %v130_v25, 0  ;;  %v132_v27 = vperm.slane %v130_v25, 1 }
 0x184   :  { %v135_v28 = vsub.f32 %v105_v11, %v131_v26  ;;  %v136_v30 = vsub.f32 %v108_v14, %v132_v27  ;;  %v313_v27 = vld [vmem:[%s537_s4] ss:$0 sm:$0xff] }
 0x186   :  { %v137_v29 = vmul.f32 1.442695, %v135_v28  ;;  %v139_v31 = vmul.f32 1.442695, %v136_v30 }
 0x188   :  { %314 = vpow2.f32 %v137_v29 }
 0x189   :  { %316 = vpow2.f32 %v139_v31 }
 0x18a   :  { %318 = vpow2.f32 %v125_v33 }
 0x18e   :  { %v315_v32 = vpop.eup %314 }
 0x18f   :  { %146 = vperm.xlu2 %311, %v315_v32   ;;  %v317_v34 = vpop.eup %316 }
 0x190   :  { %v319_v35 = vpop.eup %318 }
 0x191   :  { %v142_v7 = vmul.f32 %v319_v35, %v141_v63 }
 0x197   :  { %149 = vperm.xlu2 %311, %v317_v34  }
 0x19f   :  { %164 = vperm.xlu2 %311, %v319_v35  }
 0x1e9   :  { %v147_v36 = vpop.permute.xlu2 %146 }
 0x1ea   :  { %v170_v37 = vmul.f32 %v147_v36, %v91_v0  ;;  %v151_v42 = vperm.slane %v147_v36, %v113_v13  ;;  %v226_v0 = vld [vmem:[#allocation11 + $0x18] sm:$0xff] }
 0x1eb   :  { %242 = vmatpush.msra.mxu0 %v226_v0 }
 0x1ec   :  { %v172_v38 = vsel %vm102_vm0, %v170_v37, 0.0 }
 0x1ed   :  { %v173_v39 = vrot.slane %v172_v38, 4  ;;  %243 = vmatpush.msra.mxu0 %v225_v3 }
 0x1ef   :  { %v174_v40 = vadd.f32 %v173_v39, %v172_v38  ;;  %244 = vmatpush.msra.mxu0 %v224_v5 }
 0x1f1   :  { %v150_v41 = vpop.permute.xlu2 %149  ;;  %v175_v45 = vrot.slane %v174_v40, 2  ;;  %245 = vmatpush.msra.mxu0 %v223_v21 }
 0x1f2   :  { %v152_v43 = vperm.slane %v150_v41, %v113_v13  ;;  %v171_v44 = vmul.f32 %v150_v41, %v92_v6  ;;  %v220_v6 = vld [vmem:[#allocation10 + $0x8] sm:$0xff] }
 0x1f3   :  { %v176_v50 = vadd.f32 %v175_v45, %v174_v40  ;;  %266 = vmatpush.msra.mxu1 %v220_v6 }
 0x1f4   :  { %v179_v46 = vsel %vm102_vm0, %v171_v44, 0.0  ;;  %v153_v47 = vsel %vm116_vm2, %v152_v43, %v151_v42 }
 0x1f5   :  { %v180_v48 = vrot.slane %v179_v46, 4  ;;  %v155_v49 = vsel %vm119_vm3, %v153_v47, 0.0  ;;  %v177_v53 = vrot.slane %v176_v50, 1  ;;  %267 = vmatpush.msra.mxu1 %v219_v22 }
 0x1f6   :  { %156 = vadd.xlane.f32.xlu0 %v155_v49  ;;  %299 = vmatmul.msk.f32.vlgmr.msra.gmra.mxu1 %vm102_vm0, %v504_v1 }
 0x1f7   :  { %v181_v51 = vadd.f32 %v180_v48, %v179_v46  ;;  %v178_v58 = vadd.f32 %v177_v53, %v176_v50 }
 0x1f9   :  { %v182_v52 = vrot.slane %v181_v51, 2  ;;  %v165_v57 = vpop.permute.xlu2 %164 }
 0x1fa   :  { %v167_v60 = vmul.f32 %v165_v57, %v161_v56 }
 0x1fb   :  { %v183_v54 = vadd.f32 %v182_v52, %v181_v51 }
 0x1fd   :  { %v184_v55 = vrot.slane %v183_v54, 1 }
 0x1ff   :  { %v185_v59 = vadd.f32 %v184_v55, %v183_v54 }
 0x201   :  { %v188_v61 = vsel %vm116_vm2, %v185_v59, %v178_v58 }
 0x202   :  { %v190_v62 = vadd.f32 %v188_v61, %v167_v60 }
 0x204   :  { %192 = vst.msk [vmem:[#allocation4] sm:$0x3] %vm89_vm4, %v190_v62 }
 0x20b   :  { %v197_v23 = vld [vmem:[#allocation4] sm:$0x3] }
 0x269   :  { %v157_v8 = vpop.xlane.xlu0 %156 }
 0x26a   :  { %v158_v9 = vadd.f32 %v157_v8, %v142_v7 }
 0x26c   :  { %160 = vst.msk [vmem:[#allocation3] sm:$0x3] %vm86_vm1, %v158_v9 }
 0x273   :  { %v198_v10 = vld [vmem:[#allocation3] sm:$0x3]  ;;  %v269_v26 = vpop.f32.mrf.mxu1 }
 0x274   :  { %320 = vrcp.f32 %v198_v10  ;;  %v210_v14 = vand.u32 2147483648, %v198_v10  ;;  %v208_v16 = vand.u32 2147483647, %v198_v10  ;;  %vm204_vm6 = vweird.f32 %v198_v10 }
 0x276   :  { %v211_v18 = vor.u32 1.1754944e-38, %v210_v14  ;;  %vm209_vm8 = vcmp.eq.f32.partialorder %v208_v16, 8.507059e+37 }
 0x27a   :  { %v321_v11 = vpop.eup %320 }
 0x27b   :  { %v200_v12 = vmul.f32 %v321_v11, %v198_v10  ;;  %vm205_vm5 = vweird.f32 %v321_v11 }
 0x27c   :  { %vm206_vm7 = vmor %vm204_vm6, %vm205_vm5 }
 0x27d   :  { %v201_v13 = vsub.f32 1.0, %v200_v12 }
 0x27f   :  { %v202_v15 = vmul.f32 %v321_v11, %v201_v13 }
 0x281   :  { %v203_v17 = vadd.f32 %v321_v11, %v202_v15 }
 0x283   :  { %v207_v19 = vsel %vm206_vm7, %v321_v11, %v203_v17 }
 0x284   :  { %v212_v20 = vsel %vm209_vm8, %v211_v18, %v207_v19 }
 0x285   :  { %215 = vperm.xlu0 %312, %v212_v20  }
 0x2f7   :  { %v216_v24 = vpop.permute.xlu0 %215 }
 0x2f8   :  { %v218_v25 = vmul.f32 %v216_v24, %v197_v23 }
 0x2fa   :  { %298 = vmatmul.msk.f32.vlgmr.msra.gmra.mxu0 %vm102_vm0, %v218_v25 }
 0x377   :  { %v247_v28 = vpop.f32.mrf.mxu0 }
 0x378   :  { %v270_v29 = vadd.f32 %v269_v26, %v247_v28 }
 0x37a   :  { %v276_v30 = vadd.f32 %v313_v27, %v270_v29 }
 0x37c   :  { %322 = vtanh.f32 %v276_v30 }
 0x382   :  { %v323_v1 = vpop.eup %322 }
 0x383   :  { %278 = vst.msk [vmem:[#allocation13] sm:$0x3] %vm89_vm4, %v323_v1 }
 0x384   :  { %289 = dma.vmem_to_hbm [thread:$0]  %s285_s14, 32, %s287_s17, [#allocation7]  }
 0x385   :  { %450 = dma.done.wait [#allocation7], 32  }
 0x386   :  { %451 = vsyncadd [#allocation7], 4294967264 }
 0x387   :  { %294 = vsyncpa [#allocation6], 1 }
 0x388   :  { %295 = vsyncpa [#allocation9], 1 }
 0x389   :  { %296 = vsyncpa [#allocation12], 1 }
 0x38a   :  { %297 = vsyncpa [#allocation7], 1 }

</bundles_post_ra>
